<compile_context>
chip_gen: v6e
topology: v6e:2x2x1
jax: 0.10.0
libtpu: 0.0.40
codegen_flags: <defaults>
</compile_context>

<pallas_src>
import functools
import math

import jax
import jax.numpy as jnp
from jax.experimental import pallas as pl
from jax.experimental.pallas import tpu as pltpu


def _round_up(v, mult):
    return ((v + mult - 1) // mult) * mult


def _sublane_multiple(dtype):
    # Sub-32-bit dtypes pack rows along sublanes: f32 -> 8, bf16 -> 16, int8 -> 32.
    return {4: 8, 2: 16, 1: 32}.get(jnp.dtype(dtype).itemsize, 8)


def _vmem_tile_bytes(rows, cols, dtype):
    it = jnp.dtype(dtype).itemsize
    sub = _sublane_multiple(dtype)
    return _round_up(max(rows, 1), sub) * _round_up(max(cols, 1), 128) * it


def _fc_kernel(x_ref, w_ref, b_ref, o_ref, acc_ref, *, use_relu, compute_dtype):
    """One (tm, tn) output tile, accumulated over the K grid axis (last axis)."""
    k = pl.program_id(2)

    @pl.when(k == 0)
    def _():
        acc_ref[...] = jnp.zeros_like(acc_ref)

    xv = x_ref[...]
    wv = w_ref[...]
    if compute_dtype is not None:  # optional bf16-native MXU path
        xv = xv.astype(compute_dtype)
        wv = wv.astype(compute_dtype)
    acc_ref[...] += jnp.dot(xv, wv, preferred_element_type=jnp.float32)

    @pl.when(k == pl.num_programs(2) - 1)
    def _():
        y = acc_ref[...] + b_ref[...].astype(jnp.float32)
        if use_relu:
            y = jnp.maximum(y, 0.0)
        # TODO(synk): dropout_r > 0 (training-mode nn.Dropout) not implemented;
        # the module default dropout_r=0.0 makes it an identity.
        o_ref[...] = y.astype(o_ref.dtype)


@functools.partial(
    jax.jit, static_argnames=("tm", "tn", "tk", "use_relu", "compute_dtype"))
def fc_forward(x, w, b, *, tm=None, tn=None, tk=None, use_relu=True,
               compute_dtype=None):
    """FC forward: x (..., in_size) -> (..., out_size).

    w: (in_size, out_size)   (transposed vs. torch.nn.Linear.weight)
    b: (1, out_size)
    """
    in_size = x.shape[-1]
    assert w.shape[0] == in_size and b.shape == (1, w.shape[1])
    out_size = w.shape[1]
    lead = x.shape[:-1]
    m = math.prod(lead) if lead else 1

    if m == 0:  # zero-sized leading dims: nothing to do
        return jnp.zeros((*lead, out_size), dtype=x.dtype)

    x2 = x.reshape(m, in_size)

    x_it = jnp.dtype(x.dtype).itemsize
    w_it = jnp.dtype(w.dtype).itemsize
    b_it = jnp.dtype(b.dtype).itemsize
    sub = _sublane_multiple(x.dtype)

    # ---------------- M tile ----------------
    if tm is not None:
        tm_eff = min(_round_up(tm, sub), _round_up(m, sub))
    else:
        tm_target = 256 if x_it >= 4 else 512
        if m <= tm_target:
            tm_eff = _round_up(m, sub)
        else:
            # Even number of M steps so v7x megacore sharding stays balanced.
            steps = pl.cdiv(m, tm_target)
            steps += steps % 2
            tm_eff = _round_up(pl.cdiv(m, steps), sub)

    weight_budget = 8 * 1024 * 1024  # bytes of resident weight stripe per buffer

    # ---------------- N tile ----------------
    if tn is not None:
        tn_eff = _round_up(min(tn, out_size), 128)
        if tn_eff >= out_size:
            tn_eff = out_size
    else:
        if in_size * out_size * w_it <= weight_budget or out_size <= 512:
            tn_eff = out_size
        else:
            tn_eff = 512  # lane-dense multiple of 128; ragged last stripe is masked

    # ---------------- K tile ----------------
    if tk is not None:
        tk_eff = in_size if tk >= in_size else tk
    else:
        stripe_w = in_size * tn_eff * w_it
        stripe_x = 2 * tm_eff * in_size * x_it
        tk_eff = in_size
        if max(stripe_w, stripe_x) > weight_budget:
            for cand in (512, 384, 256, 128):
                if in_size % cand == 0:
                    tk_eff = cand
                    break
    # A ragged last K block would pollute the reduction with out-of-bounds data,
    # so only tile K with an exact, lane-aligned divisor.
    if tk_eff != in_size and (in_size % tk_eff != 0 or tk_eff % 128 != 0):
        tk_eff = in_size

    nm = pl.cdiv(m, tm_eff)
    nn = pl.cdiv(out_size, tn_eff)
    nk = in_size // tk_eff
    grid = (nm, nn, nk)

    # Grid-invariant operands only need a single VMEM buffer.
    w_resident = (nn == 1 and nk == 1)
    b_resident = (nn == 1)

    x_spec = pl.BlockSpec((tm_eff, tk_eff), lambda i, j, k: (i, k))
    w_spec = pl.BlockSpec((tk_eff, tn_eff), lambda i, j, k: (k, j),
                          pipeline_mode=pl.Buffered(1) if w_resident else None)
    b_spec = pl.BlockSpec((1, tn_eff), lambda i, j, k: (0, j),
                          pipeline_mode=pl.Buffered(1) if b_resident else None)
    o_spec = pl.BlockSpec((tm_eff, tn_eff), lambda i, j, k: (i, j))

    # Explicit VMEM budget (padded tiles x buffer counts) + headroom.
    w_bufs = 1 if w_resident else 2
    b_bufs = 1 if b_resident else 2
    vmem_bytes = (2 * _vmem_tile_bytes(tm_eff, tk_eff, x.dtype)
                  + w_bufs * _vmem_tile_bytes(tk_eff, tn_eff, w.dtype)
                  + b_bufs * _vmem_tile_bytes(1, tn_eff, b.dtype)
                  + 2 * _vmem_tile_bytes(tm_eff, tn_eff, x.dtype)
                  + _vmem_tile_bytes(tm_eff, tn_eff, jnp.float32))
    vmem_limit = min(128 * 1024 * 1024,
                     vmem_bytes + vmem_bytes // 4 + 2 * 1024 * 1024)

    cost = pl.CostEstimate(
        flops=2 * m * in_size * out_size,
        transcendentals=0,
        bytes_accessed=(m * in_size * x_it
                        + in_size * out_size * w_it
                        + out_size * b_it
                        + m * out_size * x_it),
    )

    out = pl.pallas_call(
        functools.partial(_fc_kernel, use_relu=use_relu,
                          compute_dtype=compute_dtype),
        out_shape=jax.ShapeDtypeStruct((m, out_size), x.dtype),
        grid_spec=pltpu.PrefetchScalarGridSpec(
            num_scalar_prefetch=0,
            grid=grid,
            in_specs=[x_spec, w_spec, b_spec],
            out_specs=o_spec,
            scratch_shapes=[pltpu.VMEM((tm_eff, tn_eff), jnp.float32)],
        ),
        compiler_params=pltpu.CompilerParams(
            # M / N tiles are independent (megacore-shardable); K is a reduction.
            dimension_semantics=("parallel", "parallel", "arbitrary"),
            vmem_limit_bytes=int(vmem_limit),
        ),
        cost_estimate=cost,
    )(x2, w, b)

    return out.reshape(*lead, out_size)


def init_fc_params(key, in_size, out_size, dtype=jnp.float32):
    """Deterministic synthetic init (uniform, PyTorch-Linear-like bounds)."""
    k1, k2 = jax.random.split(key, 2)
    bound = 1.0 / (in_size ** 0.5)
    w = jax.random.uniform(k1, (in_size, out_size), dtype, -bound, bound)
    b = jax.random.uniform(k2, (1, out_size), dtype, -bound, bound)
    return w, b


if __name__ == "__main__":
    key = jax.random.PRNGKey(0)
    kx1, kp1, kx2, kp2 = jax.random.split(key, 4)

    # --- Test 1: small lane-dense FC; weight fully resident (Buffered(1) path).
    batch, seq, in_size, out_size = 2, 8, 128, 256
    x1 = jax.random.normal(kx1, (batch, seq, in_size), jnp.float32)
    w1, b1 = init_fc_params(kp1, in_size, out_size)
    y1 = jax.block_until_ready(fc_forward(x1, w1, b1))
    y1_ref = jnp.maximum(x1 @ w1 + b1[0], 0.0)
    assert y1.shape == (batch, seq, out_size)
    assert jnp.allclose(y1, y1_ref, atol=1e-5, rtol=1e-5)

    # --- Test 2: exercises the tiled path (ragged M, N stripes, K reduction axis).
    batch2, seq2, in2, out2 = 3, 10, 512, 512
    x2 = jax.random.normal(kx2, (batch2, seq2, in2), jnp.float32)
    w2, bias2 = init_fc_params(kp2, in2, out2)
    y2 = jax.block_until_ready(fc_forward(x2, w2, bias2, tn=256, tk=128))
    y2_ref = jnp.maximum(x2 @ w2 + bias2[0], 0.0)
    assert y2.shape == (batch2, seq2, out2)
    assert jnp.allclose(y2, y2_ref, atol=5e-4, rtol=5e-4)

    print("KERNEL_OK")
</pallas_src>

<mosaic_0001>
module attributes {stable_mosaic.version = 11 : i64} {
  func.func @_fc_kernel(%arg0: i32, %arg1: i32, %arg2: i32, %arg3: memref<16x128xf32, #tpu.memory_space<vmem>>, %arg4: memref<128x256xf32, #tpu.memory_space<vmem>>, %arg5: memref<1x256xf32, #tpu.memory_space<vmem>>, %arg6: memref<16x256xf32, #tpu.memory_space<vmem>>, %arg7: memref<16x256xf32, #tpu.memory_space<vmem>>) attributes {dimension_semantics = [#tpu.dimension_semantics<parallel>, #tpu.dimension_semantics<parallel>, #tpu.dimension_semantics<arbitrary>], iteration_bounds = array<i64: 1, 1, 1>, scalar_prefetch = 0 : i64, scratch_operands = 1 : i64, tpu.core_type = #tpu.core_type<tc>, window_params = [{transform_indices = @transform_0, window_bounds = array<i64: 16, 128>}, {pipeline_mode = #tpu.pipeline_mode<synchronous>, transform_indices = @transform_1, window_bounds = array<i64: 128, 256>}, {pipeline_mode = #tpu.pipeline_mode<synchronous>, transform_indices = @transform_2, window_bounds = array<i64: 1, 256>}, {transform_indices = @transform_3, window_bounds = array<i64: 16, 256>}]} {
    %c0_i32 = arith.constant 0 : i32
    %0 = arith.cmpi eq, %arg2, %c0_i32 : i32
    %1 = arith.extui %0 : i1 to i32
    %c0_i32_0 = arith.constant 0 : i32
    %2 = arith.cmpi ne, %1, %c0_i32_0 : i32
    scf.if %2 {
      %cst_10 = arith.constant 0.000000e+00 : f32
      %12 = vector.broadcast %cst_10 : f32 to vector<16x256xf32>
      %c0_11 = arith.constant 0 : index
      %c0_12 = arith.constant 0 : index
      %13 = vector.load %arg7[%c0_11, %c0_12] : memref<16x256xf32, #tpu.memory_space<vmem>>, vector<16x256xf32>
      tpu.vector_store %arg7[%c0_11, %c0_12], %12 {strides = array<i32>} : memref<16x256xf32, #tpu.memory_space<vmem>>, vector<16x256xf32>,
    } else {
    }
    %c0 = arith.constant 0 : index
    %c0_1 = arith.constant 0 : index
    %3 = vector.load %arg3[%c0, %c0_1] : memref<16x128xf32, #tpu.memory_space<vmem>>, vector<16x128xf32>
    %c0_2 = arith.constant 0 : index
    %c0_3 = arith.constant 0 : index
    %4 = vector.load %arg4[%c0_2, %c0_3] : memref<128x256xf32, #tpu.memory_space<vmem>>, vector<128x256xf32>
    %c0_4 = arith.constant 0 : index
    %c0_5 = arith.constant 0 : index
    %5 = vector.load %arg7[%c0_4, %c0_5] : memref<16x256xf32, #tpu.memory_space<vmem>>, vector<16x256xf32>
    %cst = arith.constant dense<0.000000e+00> : vector<16x256xf32>
    %6 = tpu.matmul %3, %4, %cst {dimension_numbers = #tpu.dot_dimension_numbers<[1], [0], [0], [1], [0, 0, 1, 1], [], []>} : vector<16x128xf32>, vector<128x256xf32>, vector<16x256xf32> -> vector<16x256xf32>
    %7 = arith.addf %5, %6 : vector<16x256xf32>
    %c0_6 = arith.constant 0 : index
    %c0_7 = arith.constant 0 : index
    %8 = vector.load %arg7[%c0_6, %c0_7] : memref<16x256xf32, #tpu.memory_space<vmem>>, vector<16x256xf32>
    tpu.vector_store %arg7[%c0_6, %c0_7], %7 {strides = array<i32>} : memref<16x256xf32, #tpu.memory_space<vmem>>, vector<16x256xf32>,
    %c0_i32_8 = arith.constant 0 : i32
    %9 = arith.cmpi eq, %arg2, %c0_i32_8 : i32
    %10 = arith.extui %9 : i1 to i32
    %c0_i32_9 = arith.constant 0 : i32
    %11 = arith.cmpi ne, %10, %c0_i32_9 : i32
    scf.if %11 {
      %c0_10 = arith.constant 0 : index
      %c0_11 = arith.constant 0 : index
      %12 = vector.load %arg7[%c0_10, %c0_11] : memref<16x256xf32, #tpu.memory_space<vmem>>, vector<16x256xf32>
      %c0_12 = arith.constant 0 : index
      %c0_13 = arith.constant 0 : index
      %13 = vector.load %arg5[%c0_12, %c0_13] : memref<1x256xf32, #tpu.memory_space<vmem>>, vector<1x256xf32>
      %14 = vector.broadcast %13 : vector<1x256xf32> to vector<16x256xf32>
      %15 = arith.addf %12, %14 : vector<16x256xf32>
      %cst_14 = arith.constant 0.000000e+00 : f32
      %16 = vector.broadcast %cst_14 : f32 to vector<16x256xf32>
      %17 = arith.maximumf %15, %16 : vector<16x256xf32>
      %c0_15 = arith.constant 0 : index
      %c0_16 = arith.constant 0 : index
      %18 = vector.load %arg6[%c0_15, %c0_16] : memref<16x256xf32, #tpu.memory_space<vmem>>, vector<16x256xf32>
      tpu.vector_store %arg6[%c0_15, %c0_16], %17 {strides = array<i32>} : memref<16x256xf32, #tpu.memory_space<vmem>>, vector<16x256xf32>,
    } else {
    }
    return
  }
  func.func @transform_0(%arg0: i32, %arg1: i32, %arg2: i32) -> (i32, i32) {
    %c0_i32 = arith.constant 0 : i32
    return %arg0, %arg2 : i32, i32
  }
  func.func @transform_1(%arg0: i32, %arg1: i32, %arg2: i32) -> (i32, i32) {
    %c0_i32 = arith.constant 0 : i32
    return %arg2, %arg1 : i32, i32
  }
  func.func @transform_2(%arg0: i32, %arg1: i32, %arg2: i32) -> (i32, i32) {
    %c0_i32 = arith.constant 0 : i32
    %c0_i32_0 = arith.constant 0 : i32
    return %c0_i32, %arg1 : i32, i32
  }
  func.func @transform_3(%arg0: i32, %arg1: i32, %arg2: i32) -> (i32, i32) {
    %c0_i32 = arith.constant 0 : i32
    return %arg0, %arg1 : i32, i32
  }
}

</mosaic_0001>

<bundles_post_ra>
// kernel: fc_forward.1
= control target key start
LH: loop header
LB: loop body
LE: loop exit
PB: predicated region body
PF: predicated region fallthrough
CT: control target
= control target key end

     0   :  { %8 = vsyncpa [#allocation4], 0  ;;  %s375_s0 = inlined_call_operand.hbm [shape: f32[16,128], index: 0, kind: input, shape index: {}]   ;;  %s376_s1 = inlined_call_operand.hbm [shape: f32[128,256], index: 1, kind: input, shape index: {}]   ;;  %s377_s2 = inlined_call_operand.vmem [shape: f32[1,256], index: 2, kind: input, shape index: {}]   ;;  %s378_s3 = inlined_call_operand.hbm [shape: f32[16,256], index: 3, kind: output, shape index: {}]  }
   0x1   :  { %9 = vsyncpa [#allocation7], 0 }
   0x2   :  { %10 = vsyncpa [#allocation5], 0  ;;  %s329_s12 = smov [#allocation3]  }
   0x3   :  { %s16_s13 = sshll.u32 %s329_s12, 4  ;;  %s17_s13 = int_to_ptr.vmem [resolvable:$true] %s16_s13 }
   0x4   :  { %s271_s14 = scalar_lea.vmem %s17_s13, 256  ;;  %p276_p1 = scmp.lt.s32.totalorder %s17_s13, %s17_s13 }
   0x5   :  { %p272_p0 = scmp.ne.s32.totalorder %s17_s13, %s271_s14  ;;  %p277_p2 = scmp.lt.s32.totalorder %s271_s14, %s271_s14 }
   0x7   :  { %p278_p3 = por %p277_p2, %p276_p1 }
   0x9   :  { %p279_p4 = pnand %p278_p3, %p272_p0 }
   0xb   :  { %282 = shalt.err (!%p279_p4)
}
   0xc   :  { %s330_s15 = smov 128   ;;  %s331_s16 = smov 8  }
   0xd   :  { %22 = dma.hbm_to_vmem [thread:$0]  %s375_s0, 256, %s17_s13, [#allocation4], %s330_s15, %s330_s15, %s331_s16  }
   0xe   :  { %s332_s19 = smov [#allocation6]  }
   0xf   :  { %s28_s20 = sshll.u32 %s332_s19, 4  ;;  %s29_s20 = int_to_ptr.vmem [resolvable:$true] %s28_s20 }
  0x10   :  { %s291_s21 = scalar_lea.vmem %s29_s20, 4096  ;;  %p296_p6 = scmp.lt.s32.totalorder %s29_s20, %s29_s20 }
  0x11   :  { %p292_p5 = scmp.ne.s32.totalorder %s29_s20, %s291_s21  ;;  %p297_p7 = scmp.lt.s32.totalorder %s291_s21, %s291_s21 }
  0x13   :  { %p298_p8 = por %p297_p7, %p296_p6 }
  0x15   :  { %p299_p9 = pnand %p298_p8, %p292_p5 }
  0x17   :  { %302 = shalt.err (!%p299_p9)
}
  0x18   :  { %s333_s22 = smov 256   ;;  %s334_s23 = smov 16  }
  0x19   :  { %34 = dma.hbm_to_vmem [thread:$0]  %s376_s1, 4096, %s29_s20, [#allocation7], %s333_s22, %s333_s22, %s334_s23  }
  0x1a   :  { %323 = dma.done.wait [#allocation4], 256  }
  0x1b   :  { %324 = vsyncadd [#allocation4], 4294967040 }
  0x1c   :  { %325 = dma.done.wait [#allocation7], 4096  }
  0x1d   :  { %326 = vsyncadd [#allocation7], 4294963200  ;;  %v335_v0 = vmov 0.0   ;;  %v84_v1 = vld [vmem:[#allocation6 + $0xf8] sm:$0xff]  ;;  %v83_v2 = vld [vmem:[#allocation6 + $0xf0] sm:$0xff]  ;;  %v183_v35 = vlaneseq  ;;  %s336_s26 = smov [#allocation8]  }
  0x1e   :  { %153 = vmatprep.mubr.f32.mxu0 %v335_v0  ;;  %159 = vmatprep.mubr.f32.mxu1 %v335_v0  ;;  %v82_v3 = vld [vmem:[#allocation6 + $0xe8] sm:$0xff]  ;;  %v81_v4 = vld [vmem:[#allocation6 + $0xe0] sm:$0xff]  ;;  %v80_v5 = vld [vmem:[#allocation6 + $0xd8] sm:$0xff]  ;;  %s210_s27 = sshll.u32 %s336_s26, 4  ;;  %s211_s27 = int_to_ptr.vmem [resolvable:$true] %s210_s27 }
  0x1f   :  { %89 = vmatprep.subr.mxu0 %v84_v1  ;;  %223 = vmatprep.subr.mxu1 %v84_v1  ;;  %v79_v6 = vld [vmem:[#allocation6 + $0xd0] sm:$0xff]  ;;  %v78_v7 = vld [vmem:[#allocation6 + $0xc8] sm:$0xff]  ;;  %v77_v8 = vld [vmem:[#allocation6 + $0xc0] sm:$0xff]  ;;  %v184_v36 = vshrl.u32 %v183_v35, 7  ;;  %p308_p11 = scmp.lt.s32.totalorder %s211_s27, %s211_s27 }
  0x20   :  { %90 = vmatpush1.msra.mxu0 %v83_v2  ;;  %239 = vmatpush1.msra.mxu1 %v83_v2  ;;  %v76_v9 = vld [vmem:[#allocation6 + $0xb8] sm:$0xff]  ;;  %v75_v10 = vld [vmem:[#allocation6 + $0xb0] sm:$0xff]  ;;  %v74_v11 = vld [vmem:[#allocation6 + $0xa8] sm:$0xff] }
  0x21   :  { %91 = vmatprep.subr.mxu0 %v82_v3  ;;  %224 = vmatprep.subr.mxu1 %v82_v3  ;;  %v73_v12 = vld [vmem:[#allocation6 + $0xa0] sm:$0xff]  ;;  %v72_v13 = vld [vmem:[#allocation6 + $0x98] sm:$0xff]  ;;  %v71_v14 = vld [vmem:[#allocation6 + $0x90] sm:$0xff]  ;;  %v185_v37 = vsub.s32 0, %v184_v36  ;;  %v189_v39 = vsub.s32 1, %v184_v36 }
  0x22   :  { %92 = vmatpush1.msra.mxu0 %v81_v4  ;;  %240 = vmatpush1.msra.mxu1 %v81_v4  ;;  %v70_v15 = vld [vmem:[#allocation6 + $0x88] sm:$0xff]  ;;  %v69_v16 = vld [vmem:[#allocation6 + $0x80] sm:$0xff]  ;;  %v68_v17 = vld [vmem:[#allocation6 + $0x78] sm:$0xff] }
  0x23   :  { %93 = vmatprep.subr.mxu0 %v80_v5  ;;  %225 = vmatprep.subr.mxu1 %v80_v5  ;;  %v67_v18 = vld [vmem:[#allocation6 + $0x70] sm:$0xff]  ;;  %v66_v19 = vld [vmem:[#allocation6 + $0x68] sm:$0xff]  ;;  %v65_v20 = vld [vmem:[#allocation6 + $0x60] sm:$0xff] }
  0x24   :  { %94 = vmatpush1.msra.mxu0 %v79_v6  ;;  %241 = vmatpush1.msra.mxu1 %v79_v6  ;;  %v64_v21 = vld [vmem:[#allocation6 + $0x58] sm:$0xff]  ;;  %v63_v22 = vld [vmem:[#allocation6 + $0x50] sm:$0xff]  ;;  %v62_v23 = vld [vmem:[#allocation6 + $0x48] sm:$0xff] }
  0x25   :  { %95 = vmatprep.subr.mxu0 %v78_v7  ;;  %226 = vmatprep.subr.mxu1 %v78_v7  ;;  %v61_v24 = vld [vmem:[#allocation6 + $0x40] sm:$0xff]  ;;  %v60_v25 = vld [vmem:[#allocation6 + $0x38] sm:$0xff]  ;;  %v59_v26 = vld [vmem:[#allocation6 + $0x30] sm:$0xff] }
  0x26   :  { %96 = vmatpush1.msra.mxu0 %v77_v8  ;;  %242 = vmatpush1.msra.mxu1 %v77_v8  ;;  %v58_v27 = vld [vmem:[#allocation6 + $0x28] sm:$0xff]  ;;  %v57_v28 = vld [vmem:[#allocation6 + $0x20] sm:$0xff]  ;;  %v56_v29 = vld [vmem:[#allocation6 + $0x18] sm:$0xff] }
  0x27   :  { %97 = vmatprep.subr.mxu0 %v76_v9  ;;  %227 = vmatprep.subr.mxu1 %v76_v9  ;;  %v55_v30 = vld [vmem:[#allocation6 + $0x10] sm:$0xff]  ;;  %v54_v31 = vld [vmem:[#allocation6 + $0x8] sm:$0xff]  ;;  %v53_v32 = vld [vmem:[#allocation6] sm:$0xff] }
  0x28   :  { %98 = vmatpush1.msra.mxu0 %v75_v10  ;;  %243 = vmatpush1.msra.mxu1 %v75_v10  ;;  %v51_v33 = vld [vmem:[#allocation3] sm:$0xff]  ;;  %v52_v34 = vld [vmem:[#allocation3 + $0x8] sm:$0xff] }
  0x29   :  { %99 = vmatprep.subr.mxu0 %v74_v11  ;;  %228 = vmatprep.subr.mxu1 %v74_v11  ;;  %v181_v38 = vld [vmem:[%s377_s2] sm:$0x3]  ;;  %s303_s2 = scalar_lea.vmem %s211_s27, 512 }
  0x2a   :  { %100 = vmatpush1.msra.mxu0 %v73_v12  ;;  %244 = vmatpush1.msra.mxu1 %v73_v12  ;;  %v186_v40 = vrot.slane %v181_v38, %v185_v37  ;;  %v190_v41 = vrot.slane %v181_v38, %v189_v39  ;;  %p304_p10 = scmp.ne.s32.totalorder %s211_s27, %s303_s2  ;;  %p309_p12 = scmp.lt.s32.totalorder %s303_s2, %s303_s2 }
  0x2b   :  { %101 = vmatprep.subr.mxu0 %v72_v13  ;;  %229 = vmatprep.subr.mxu1 %v72_v13 }
  0x2c   :  { %102 = vmatpush1.msra.mxu0 %v71_v14  ;;  %245 = vmatpush1.msra.mxu1 %v71_v14  ;;  %p310_p13 = por %p309_p12, %p308_p11 }
  0x2d   :  { %103 = vmatprep.subr.mxu0 %v70_v15  ;;  %230 = vmatprep.subr.mxu1 %v70_v15 }
  0x2e   :  { %104 = vmatpush1.msra.mxu0 %v69_v16  ;;  %246 = vmatpush1.msra.mxu1 %v69_v16  ;;  %p311_p0 = pnand %p310_p13, %p304_p10 }
  0x2f   :  { %105 = vmatprep.subr.mxu0 %v68_v17  ;;  %231 = vmatprep.subr.mxu1 %v68_v17 }
  0x30   :  { %106 = vmatpush1.msra.mxu0 %v67_v18  ;;  %247 = vmatpush1.msra.mxu1 %v67_v18 }
  0x31   :  { %107 = vmatprep.subr.mxu0 %v66_v19  ;;  %232 = vmatprep.subr.mxu1 %v66_v19 }
  0x32   :  { %108 = vmatpush1.msra.mxu0 %v65_v20  ;;  %248 = vmatpush1.msra.mxu1 %v65_v20 }
  0x33   :  { %109 = vmatprep.subr.mxu0 %v64_v21  ;;  %233 = vmatprep.subr.mxu1 %v64_v21 }
  0x34   :  { %110 = vmatpush1.msra.mxu0 %v63_v22  ;;  %249 = vmatpush1.msra.mxu1 %v63_v22 }
  0x35   :  { %111 = vmatprep.subr.mxu0 %v62_v23  ;;  %234 = vmatprep.subr.mxu1 %v62_v23 }
  0x36   :  { %112 = vmatpush1.msra.mxu0 %v61_v24  ;;  %250 = vmatpush1.msra.mxu1 %v61_v24 }
  0x37   :  { %113 = vmatprep.subr.mxu0 %v60_v25  ;;  %235 = vmatprep.subr.mxu1 %v60_v25 }
  0x38   :  { %114 = vmatpush1.msra.mxu0 %v59_v26  ;;  %251 = vmatpush1.msra.mxu1 %v59_v26 }
  0x39   :  { %115 = vmatprep.subr.mxu0 %v58_v27  ;;  %236 = vmatprep.subr.mxu1 %v58_v27 }
  0x3a   :  { %116 = vmatpush1.msra.mxu0 %v57_v28  ;;  %252 = vmatpush1.msra.mxu1 %v57_v28 }
  0x3b   :  { %117 = vmatprep.subr.mxu0 %v56_v29  ;;  %237 = vmatprep.subr.mxu1 %v56_v29 }
  0x3c   :  { %118 = vmatpush1.msra.mxu0 %v55_v30  ;;  %253 = vmatpush1.msra.mxu1 %v55_v30 }
  0x3d   :  { %119 = vmatprep.subr.mxu0 %v54_v31  ;;  %238 = vmatprep.subr.mxu1 %v54_v31 }
  0x3e   :  { %120 = vmatpush1.msra.mxu0 %v53_v32  ;;  %254 = vmatpush1.msra.mxu1 %v53_v32 }
  0x3f   :  { %154 = vmatmul.mubr.f32.vlgmr.msra.gmra.mxu0 %v51_v33  ;;  %160 = vmatmul.mubr.f32.vlgmr.msra.gmra.mxu1 %v52_v34 }
  0xff   :  { %v155_v42 = vpop.f32.mrf.mxu0  ;;  %v161_v43 = vpop.f32.mrf.mxu1 }
 0x100   :  { %v193_v44 = vadd.f32 %v186_v40, %v155_v42  ;;  %v195_v45 = vadd.f32 %v186_v40, %v161_v43 }
 0x101   :  { %v157_v46 = vpop.f32.mrf.mxu0  ;;  %v163_v47 = vpop.f32.mrf.mxu1 }
 0x102   :  { %v197_v48 = vmax.f32 %v193_v44, 0.0  ;;  %v199_v49 = vmax.f32 %v195_v45, 0.0  ;;  %v194_v50 = vadd.f32 %v190_v41, %v157_v46  ;;  %v196_v51 = vadd.f32 %v190_v41, %v163_v47 }
 0x104   :  { %201 = vst [vmem:[#allocation8] sm:$0xff] %v197_v48  ;;  %203 = vst [vmem:[#allocation8 + $0x10] sm:$0xff] %v199_v49  ;;  %v198_v52 = vmax.f32 %v194_v50, 0.0  ;;  %v200_v53 = vmax.f32 %v196_v51, 0.0 }
 0x106   :  { %202 = vst [vmem:[#allocation8 + $0x8] sm:$0xff] %v198_v52  ;;  %204 = vst [vmem:[#allocation8 + $0x18] sm:$0xff] %v200_v53 }
 0x107   :  { %314 = shalt.err (!%p311_p0)
}
 0x108   :  { %216 = dma.vmem_to_hbm [thread:$0]  %s211_s27, 512, %s378_s3, [#allocation5], %s333_s22, %s333_s22, %s334_s23  }
 0x109   :  { %327 = dma.done.wait [#allocation5], 512  }
 0x10a   :  { %328 = vsyncadd [#allocation5], 4294966784 }
 0x10b   :  { %220 = vsyncpa [#allocation4], 1 }
 0x10c   :  { %221 = vsyncpa [#allocation7], 1 }
 0x10d   :  { %222 = vsyncpa [#allocation5], 1 }

</bundles_post_ra>
